<compile_context>
chip_gen: v6e
topology: v6e:2x2x1
jax: 0.10.0
libtpu: 0.0.40
codegen_flags: <defaults>
</compile_context>

<pallas_src>
import jax
import jax.numpy as jnp
from jax.experimental import pallas as pl
from jax.experimental.pallas import tpu as pltpu

_MIB = 1024 * 1024


def _round_up(n, m):
    return ((n + m - 1) // m) * m


def _vmem_capacity_bytes() -> int:
    """Physical VMEM per TensorCore; conservative (v7x-sized) fallback."""
    try:
        cap = getattr(pltpu.get_tpu_info(), "vmem_capacity_bytes", None)
        if cap:
            return int(cap)
    except Exception:
        pass
    return 64 * _MIB


def _uncertainty_kernel(b_ref, x_ref, w_ref, out_ref):
    # b_ref: (2,) f32 in SMEM   x_ref: (TB, H)   w_ref: (H, 2)   out_ref: (TB, 2) f32
    z = jnp.dot(x_ref[...], w_ref[...],
                preferred_element_type=jnp.float32)              # (TB, 2) f32
    col = jax.lax.broadcasted_iota(jnp.int32, z.shape, dimension=1)
    is_mean = col == 0
    z = z + jnp.where(is_mean, b_ref[0], b_ref[1])               # per-column bias (SMEM scalars)
    # Numerically-stable softplus (matches torch.nn.functional.softplus).
    # Computed on both columns (EUP slot is idle here); the mean column is
    # re-selected below, so this costs nothing extra.
    sp = jnp.maximum(z, 0.0) + jnp.log1p(jnp.exp(-jnp.abs(z))) + 1e-6
    out_ref[...] = jnp.where(is_mean, z, sp).astype(out_ref.dtype)


def uncertainty_head(x, w_mean, b_mean, w_var, b_var, *, tile_b=None):
    """x: (B, H). w_*: (H, 1), b_*: (1,). Returns (mean (B, 1), variance (B, 1)), f32."""
    B, H = x.shape
    itemsize = jnp.dtype(x.dtype).itemsize

    # Fuse the two heads: one resident weight block, one MXU call per tile.
    w = jnp.concatenate([w_mean.reshape(H, 1), w_var.reshape(H, 1)],
                        axis=1).astype(x.dtype)                                  # (H, 2)
    b = jnp.concatenate([jnp.ravel(b_mean), jnp.ravel(b_var)]).astype(jnp.float32)  # (2,)

    vmem_cap = _vmem_capacity_bytes()
    # Double-buffered per-row VMEM cost: x block + lane-padded (tile_b, 128) f32 out block.
    per_row = 2 * H * itemsize + 2 * 128 * 4

    if tile_b is None:
        if B <= 128:
            tile_b = B                          # one full block, no masking at all
        else:
            budget = (6 * vmem_cap) // 10       # ~60% of VMEM for streamed buffers
            tile_b = max(128, (budget // per_row // 128) * 128)
            # >= 2 grid steps so ("parallel",) can shard across v7x's two TCs.
            tile_b = min(tile_b, _round_up(pl.cdiv(B, 2), 128))
            tile_b = min(tile_b, _round_up(B, 128))

    grid = (pl.cdiv(B, tile_b),)

    needed = tile_b * per_row + 4 * _MIB        # + weight / bias / margin
    vmem_limit = int(min(vmem_cap - 8 * _MIB, needed))
    vmem_limit = max(vmem_limit, 32 * _MIB)

    cost = pl.CostEstimate(
        flops=2 * B * H * 2,
        transcendentals=4 * B,
        bytes_accessed=(B * H * itemsize + H * 2 * itemsize + B * 2 * 4),
    )

    out = pl.pallas_call(
        _uncertainty_kernel,
        out_shape=jax.ShapeDtypeStruct((B, 2), jnp.float32),
        grid_spec=pltpu.PrefetchScalarGridSpec(
            num_scalar_prefetch=0,
            grid=grid,
            in_specs=[
                pl.BlockSpec(memory_space=pltpu.MemorySpace.SMEM),  # biases (2,) scalars
                pl.BlockSpec((tile_b, H), lambda i: (i, 0)),        # x row tile (streamed)
                pl.BlockSpec((H, 2), lambda i: (0, 0)),             # fused weight (resident)
            ],
            out_specs=pl.BlockSpec((tile_b, 2), lambda i: (i, 0)),  # mean | var
        ),
        compiler_params=pltpu.CompilerParams(
            dimension_semantics=("parallel",),
            vmem_limit_bytes=vmem_limit),
        cost_estimate=cost,
    )(b, x, w)

    mean = out[:, 0:1]
    var = out[:, 1:2]
    return mean, var


if __name__ == "__main__":
    key = jax.random.PRNGKey(0)
    B, H = 8, 32  # batch=8, hidden_dim=32

    kx, kwm, kbm, kwv, kbv = jax.random.split(key, 5)
    x = jax.random.normal(kx, (B, H), dtype=jnp.float32)

    # nn.Linear(hidden_dim, 1): weight (1, H) in torch -> stored transposed as
    # (H, 1); bias (1,). Deterministic uniform init.
    bound = 1.0 / float(H) ** 0.5
    w_mean = jax.random.uniform(kwm, (H, 1), jnp.float32, -bound, bound)
    b_mean = jax.random.uniform(kbm, (1,), jnp.float32, -bound, bound)
    w_var = jax.random.uniform(kwv, (H, 1), jnp.float32, -bound, bound)
    b_var = jax.random.uniform(kbv, (1,), jnp.float32, -bound, bound)

    mean, var = jax.jit(uncertainty_head)(x, w_mean, b_mean, w_var, b_var)
    jax.block_until_ready((mean, var))

    ref_mean = x @ w_mean + b_mean
    ref_var = jax.nn.softplus(x @ w_var + b_var) + 1e-6

    assert mean.shape == (B, 1) and var.shape == (B, 1)
    assert jnp.allclose(mean, ref_mean, atol=1e-5, rtol=1e-5)
    assert jnp.allclose(var, ref_var, atol=1e-5, rtol=1e-5)

    print("KERNEL_OK")
</pallas_src>

<mosaic_0001>
module attributes {stable_mosaic.version = 11 : i64} {
  func.func @_uncertainty_kernel(%arg0: i32, %arg1: memref<2xf32, #tpu.memory_space<smem>>, %arg2: memref<8x32xf32, #tpu.memory_space<vmem>>, %arg3: memref<32x2xf32, #tpu.memory_space<vmem>>, %arg4: memref<8x2xf32, #tpu.memory_space<vmem>>) attributes {dimension_semantics = [#tpu.dimension_semantics<parallel>], iteration_bounds = array<i64: 1>, scalar_prefetch = 0 : i64, scratch_operands = 0 : i64, tpu.core_type = #tpu.core_type<tc>, window_params = [{transform_indices = @transform_0, window_bounds = array<i64: 2>}, {transform_indices = @transform_1, window_bounds = array<i64: 8, 32>}, {pipeline_mode = #tpu.pipeline_mode<synchronous>, transform_indices = @transform_2, window_bounds = array<i64: 32, 2>}, {transform_indices = @transform_3, window_bounds = array<i64: 8, 2>}]} {
    %c0 = arith.constant 0 : index
    %c0_0 = arith.constant 0 : index
    %0 = vector.load %arg2[%c0, %c0_0] : memref<8x32xf32, #tpu.memory_space<vmem>>, vector<8x32xf32>
    %c0_1 = arith.constant 0 : index
    %c0_2 = arith.constant 0 : index
    %1 = vector.load %arg3[%c0_1, %c0_2] : memref<32x2xf32, #tpu.memory_space<vmem>>, vector<32x2xf32>
    %cst = arith.constant dense<0.000000e+00> : vector<8x2xf32>
    %2 = tpu.matmul %0, %1, %cst {dimension_numbers = #tpu.dot_dimension_numbers<[1], [0], [0], [1], [0, 0, 1, 1], [], []>} : vector<8x32xf32>, vector<32x2xf32>, vector<8x2xf32> -> vector<8x2xf32>
    %3 = tpu.iota {dimensions = array<i32: 1>} : vector<8x2xi32>
    %c0_i32 = arith.constant 0 : i32
    %4 = vector.broadcast %c0_i32 : i32 to vector<8x2xi32>
    %5 = arith.cmpi eq, %3, %4 : vector<8x2xi32>
    %c0_3 = arith.constant 0 : index
    %6 = memref.load %arg1[%c0_3] : memref<2xf32, #tpu.memory_space<smem>>
    %c1 = arith.constant 1 : index
    %7 = memref.load %arg1[%c1] : memref<2xf32, #tpu.memory_space<smem>>
    %8 = vector.broadcast %6 : f32 to vector<8x2xf32>
    %9 = vector.broadcast %7 : f32 to vector<8x2xf32>
    %10 = arith.select %5, %8, %9 : vector<8x2xi1>, vector<8x2xf32>
    %11 = arith.addf %2, %10 : vector<8x2xf32>
    %cst_4 = arith.constant 0.000000e+00 : f32
    %12 = vector.broadcast %cst_4 : f32 to vector<8x2xf32>
    %13 = arith.maximumf %11, %12 : vector<8x2xf32>
    %14 = math.absf %11 : vector<8x2xf32>
    %cst_5 = arith.constant 0.000000e+00 : f32
    %15 = vector.broadcast %cst_5 : f32 to vector<8x2xf32>
    %16 = arith.subf %15, %14 : vector<8x2xf32>
    %17 = math.exp %16 : vector<8x2xf32>
    %18 = math.log1p %17 : vector<8x2xf32>
    %19 = arith.addf %13, %18 : vector<8x2xf32>
    %cst_6 = arith.constant 9.99999997E-7 : f32
    %20 = vector.broadcast %cst_6 : f32 to vector<8x2xf32>
    %21 = arith.addf %19, %20 : vector<8x2xf32>
    %22 = arith.select %5, %11, %21 : vector<8x2xi1>, vector<8x2xf32>
    %c0_7 = arith.constant 0 : index
    %c0_8 = arith.constant 0 : index
    %23 = vector.load %arg4[%c0_7, %c0_8] : memref<8x2xf32, #tpu.memory_space<vmem>>, vector<8x2xf32>
    tpu.vector_store %arg4[%c0_7, %c0_8], %22 {strides = array<i32>} : memref<8x2xf32, #tpu.memory_space<vmem>>, vector<8x2xf32>,
    return
  }
  func.func @transform_0(%arg0: i32) -> i32 {
    %c0_i32 = arith.constant 0 : i32
    %c0_i32_0 = arith.constant 0 : i32
    return %c0_i32 : i32
  }
  func.func @transform_1(%arg0: i32) -> (i32, i32) {
    %c0_i32 = arith.constant 0 : i32
    %c0_i32_0 = arith.constant 0 : i32
    return %arg0, %c0_i32 : i32, i32
  }
  func.func @transform_2(%arg0: i32) -> (i32, i32) {
    %c0_i32 = arith.constant 0 : i32
    %c0_i32_0 = arith.constant 0 : i32
    %c0_i32_1 = arith.constant 0 : i32
    return %c0_i32, %c0_i32_0 : i32, i32
  }
  func.func @transform_3(%arg0: i32) -> (i32, i32) {
    %c0_i32 = arith.constant 0 : i32
    %c0_i32_0 = arith.constant 0 : i32
    return %arg0, %c0_i32 : i32, i32
  }
}

</mosaic_0001>

<bundles_post_ra>
// kernel: uncertainty_head.1
= control target key start
LH: loop header
LB: loop body
LE: loop exit
PB: predicated region body
PF: predicated region fallthrough
CT: control target
= control target key end

     0   :  { %8 = vsyncpa [#allocation3], 0  ;;  %s223_s0 = inlined_call_operand.vmem [shape: f32[2], index: 0, kind: input, shape index: {}]   ;;  %s224_s1 = inlined_call_operand.vmem [shape: f32[8,32], index: 1, kind: input, shape index: {}]   ;;  %s225_s2 = inlined_call_operand.vmem [shape: f32[32,2], index: 2, kind: input, shape index: {}]   ;;  %s226_s3 = inlined_call_operand.vmem [shape: f32[8,2], index: 3, kind: output, shape index: {}]  }
   0x1   :  { %s15_s14 = sshll.u32 %s223_s0, 4  ;;  %s16_s14 = int_to_ptr.vmem [resolvable:$true] %s15_s14 }
   0x2   :  { %s163_s15 = scalar_lea.vmem %s16_s14, 16  ;;  %p168_p1 = scmp.lt.s32.totalorder %s16_s14, %s16_s14 }
   0x3   :  { %p164_p0 = scmp.ne.s32.totalorder %s16_s14, %s163_s15  ;;  %p169_p2 = scmp.lt.s32.totalorder %s163_s15, %s163_s15 }
   0x5   :  { %p170_p3 = por %p169_p2, %p168_p1 }
   0x7   :  { %p171_p4 = pnand %p170_p3, %p164_p0 }
   0x9   :  { %174 = shalt.err (!%p171_p4)
}
   0xa   :  { %s177_s16 = smov [#allocation2]  }
   0xb   :  { %18 = dma.vmem_to_smem %s16_s14, 16, %s177_s16, [#allocation3]  }
   0xc   :  { %175 = dma.done.wait [#allocation3], 16  }
   0xd   :  { %176 = vsyncadd [#allocation3], 4294967280 }
   0xe   :  { %26 = sfence }
   0xf   :  { %v31_v0 = vld [vmem:[%s225_s2 + $0x18] sm:$0xff]  ;;  %v178_v1 = vmov 0.0   ;;  %v30_v2 = vld [vmem:[%s225_s2 + $0x10] sm:$0xff]  ;;  %vm179_vm0 = vmmov 0   ;;  %v29_v3 = vld [vmem:[%s225_s2 + $0x8] sm:$0xff]  ;;  %vm40_vm1 = vcmask 261120   ;;  %v32_v6 = vlaneseq }
  0x10   :  { %145 = vmatprep.subr.mxu0 %v178_v1  ;;  %153 = vmatprep.mubr.msk.f32.mxu0 %vm179_vm0, %v178_v1  ;;  %v28_v4 = vld [vmem:[%s225_s2] sm:$0xff]  ;;  %s35_s26 = sld [smem:[#allocation2]]  ;;  %vm131_vm4 = vcmask 15360  }
  0x11   :  { %146 = vmatpush3.msra.mxu0 %v31_v0  ;;  %v27_v5 = vld [vmem:[%s224_s1] sm:$0xff]  ;;  %s138_s27 = sld [smem:[#allocation2 + $0x1]]  ;;  %v33_v7 = vand.u32 127, %v32_v6 }
  0x12   :  { %147 = vmatprep.subr.mxu0 %v178_v1 }
  0x13   :  { %148 = vmatpush3.msra.mxu0 %v30_v2  ;;  %vm34_vm2 = vcmp.eq.s32.totalorder %v33_v7, 0 }
  0x14   :  { %149 = vmatprep.subr.mxu0 %v178_v1 }
  0x15   :  { %150 = vmatpush3.msra.mxu0 %v29_v3 }
  0x16   :  { %151 = vmatprep.subr.mxu0 %v178_v1  ;;  %v37_v8 = vstv %s35_s26 }
  0x17   :  { %152 = vmatpush3.msra.mxu0 %v28_v4  ;;  %v38_v9 = vstv %s138_s27 }
  0x18   :  { %154 = vmatmul.mubr.msk.f32.vlgmr.msra.gmra.mxu0 %vm40_vm1, %v27_v5  ;;  %v39_v10 = vsel %vm34_vm2, %v37_v8, %v38_v9 }
  0xd8   :  { %v110_v11 = vpop.f32.mrf.mxu0 }
  0xd9   :  { %v111_v12 = vadd.f32 %v110_v11, %v39_v10 }
  0xda   :  { %v155_v13 = vpop.f32.mrf.mxu0 }
  0xdb   :  { %v115_v14 = vand.u32 2147483647, %v111_v12  ;;  %v114_v25 = vmax.f32 %v111_v12, 0.0 }
  0xdd   :  { %v116_v15 = vsub.f32 0.0, %v115_v14 }
  0xdf   :  { %v117_v16 = vmul.f32 1.442695, %v116_v15 }
  0xe1   :  { %159 = vpow2.f32 %v117_v16 }
  0xee   :  { %v160_v17 = vpop.eup %159 }
  0xef   :  { %v119_v18 = vadd.f32 1.0, %v160_v17  ;;  %v122_v19 = vmul.f32 -0.5, %v160_v17  ;;  %v125_v21 = vand.u32 2147483647, %v160_v17 }
  0xf1   :  { %161 = vlog2.f32 %v119_v18  ;;  %v123_v20 = vadd.f32 1.0, %v122_v19  ;;  %vm126_vm3 = vcmp.lt.f32.partialorder %v125_v21, 0.0004427343 }
  0xf3   :  { %v124_v24 = vmul.f32 %v160_v17, %v123_v20 }
  0xfe   :  { %v162_v22 = vpop.eup %161 }
  0xff   :  { %v121_v23 = vmul.f32 0.6931472, %v162_v22 }
 0x101   :  { %v127_v26 = vsel %vm126_vm3, %v124_v24, %v121_v23 }
 0x102   :  { %v128_v27 = vadd.f32 %v127_v26, %v114_v25 }
 0x104   :  { %v129_v28 = vadd.f32 1e-06, %v128_v27 }
 0x106   :  { %v130_v29 = vsel %vm34_vm2, %v111_v12, %v129_v28 }
 0x107   :  { %132 = vst.msk [vmem:[%s226_s3] sm:$0xff] %vm131_vm4, %v130_v29 }
 0x108   :  { %137 = vsyncpa [#allocation3], 1 }

</bundles_post_ra>
